<compile_context>
chip_gen: v7x
topology: tpu7x:2x2x1
jax: 0.10.0
libtpu: 0.0.40
codegen_flags: <defaults>
</compile_context>

<pallas_src>
import functools

import jax
import jax.numpy as jnp
from jax.experimental import pallas as pl
from jax.experimental.pallas import tpu as pltpu


def _const_block_spec(block_shape, index_map):
    """Constant-per-grid operand: single-buffer it when this JAX supports it."""
    try:
        return pl.BlockSpec(block_shape, index_map, pipeline_mode=pl.Buffered(1))
    except Exception:  # older jax without pipeline_mode / Buffered
        return pl.BlockSpec(block_shape, index_map)


def primary_caps_forward(x, weight, bias, *, output_caps, output_dim,
                         kernel_size, stride, tile_m=512):
    """Conv2d(VALID, stride) -> capsule reshape -> squash, fused in one kernel."""
    N, C, H, W = x.shape
    kh = kw = kernel_size
    s = stride
    OH = (H - kh) // s + 1
    OW = (W - kw) // s + 1
    C_out = output_caps * output_dim
    cdiv = lambda a, b: -(-a // b)

    # --- phase-decomposed (space-to-depth by stride) geometry -----------------
    Hs, Ws = cdiv(H, s), cdiv(W, s)            # per-phase grid (>= OH, OW)
    Qh, Qw = cdiv(kh, s), cdiv(kw, s)          # taps per phase along h / w
    max_off = (Qh - 1) * Ws + (Qw - 1)         # largest flattened tap offset
    HALO = max(128, cdiv(max_off, 128) * 128)  # lane-aligned halo block width

    Mfull = N * Hs * Ws                        # padded-grid output columns
    # tile_m: multiple of HALO; aim for >= 2 grid steps (v7x has 2 TensorCores).
    units = cdiv(Mfull, HALO)
    tile_units = max(1, tile_m // HALO)
    if units > 1:
        tile_units = min(tile_units, max(1, units // 2))
    tile_units = min(tile_units, units)
    tile_m = tile_units * HALO
    grid_m = cdiv(Mfull, tile_m)
    M_pad = grid_m * tile_m
    L = M_pad + HALO                           # flattened length incl. last halo

    # --- host glue: all O(|x|); the K x M im2col slab is never built ----------
    xb = x.astype(jnp.bfloat16)
    Hp, Wp = Hs * s, Ws * s
    if Hp != H or Wp != W:                     # pad so H, W split evenly by stride
        xb = jnp.pad(xb, ((0, 0), (0, 0), (0, Hp - H), (0, Wp - W)))
    # xs[si*s+sj, c, n*Hs*Ws + hs*Ws + ws] = x[n, c, hs*s+si, ws*s+sj]
    xs = xb.reshape(N, C, Hs, s, Ws, s).transpose(3, 5, 1, 0, 2, 4)
    xs = xs.reshape(s * s, C, Mfull)
    xs = jnp.pad(xs, ((0, 0), (0, 0), (0, L - Mfull)))   # O(|x|), fuses with transpose

    w_k = weight.transpose(2, 3, 0, 1).reshape(kh * kw, C_out, C).astype(jnp.bfloat16)
    b2d = bias.reshape(C_out, 1).astype(jnp.float32)
    gid = jnp.arange(C_out, dtype=jnp.int32) // output_dim
    cap = jnp.arange(output_caps, dtype=jnp.int32)
    g_sum = (cap[:, None] == gid[None, :]).astype(jnp.bfloat16)    # (caps, C_out)
    g_bcast = (gid[:, None] == cap[None, :]).astype(jnp.float32)   # (C_out, caps)

    def kernel(a_ref, halo_ref, w_ref, bias_ref, gsum_ref, gbc_ref, out_ref, win_ref):
        # a_ref   : (s*s, C, TM)       bf16  current M tile of xs
        # halo_ref: (s*s, C, HALO)     bf16  first HALO columns of the next tile
        # w_ref   : (kh*kw, C_out, C)  bf16  per-tap weights
        # bias_ref: (C_out, 1)         f32
        # gsum_ref: (caps, C_out)      bf16  0/1 capsule group-sum matrix
        # gbc_ref : (C_out, caps)      f32   0/1 capsule broadcast matrix
        # out_ref : (C_out, TM)        bf16  squashed conv output (transposed)
        # win_ref : (C, TM + HALO)     bf16  scratch tap window for one phase
        #
        # TODO(synk): for C_out far below the MXU width (e.g. this 32-channel
        # demo) drive the MXU explicitly with W^T stationary via
        # pltpu.matmul_push_rhs; on v7x also evaluate fp8 tap operands.
        acc = None
        for si in range(s):
            n_qi = (kh - 1 - si) // s + 1
            if n_qi <= 0:
                continue
            for sj in range(s):
                n_qj = (kw - 1 - sj) // s + 1
                if n_qj <= 0:
                    continue
                p = si * s + sj
                # assemble this phase's window: [ current tile | halo ]
                win_ref[:, :tile_m] = a_ref[p]
                win_ref[:, tile_m:] = halo_ref[p]
                for qi in range(n_qi):
                    for qj in range(n_qj):
                        i, j = qi * s + si, qj * s + sj
                        off = qi * Ws + qj           # constant column offset
                        x_tap = win_ref[:, off:off + tile_m]          # (C, TM)
                        contrib = jnp.dot(w_ref[i * kw + j], x_tap,
                                          preferred_element_type=jnp.float32)
                        acc = contrib if acc is None else acc + contrib
        conv = acc + bias_ref[...]                                    # (C_out, TM) f32
        # squash at capsule granularity; group sum on the bf16 MXU path
        convb = conv.astype(jnp.bfloat16)
        lengths2 = jnp.dot(gsum_ref[...], convb * convb,
                           preferred_element_type=jnp.float32)        # (caps, TM)
        # scale = l2/(1+l2)/l == sqrt(l2) * 1/(1+l2); 0 at zero length (PyTorch: 0/0)
        scale_c = jnp.sqrt(lengths2) * pl.reciprocal(1.0 + lengths2, approx=True)
        scale = jnp.dot(gbc_ref[...], scale_c,
                        preferred_element_type=jnp.float32)           # (C_out, TM)
        out_ref[...] = (conv * scale).astype(out_ref.dtype)

    mult = tile_m // HALO
    in_specs = [
        pl.BlockSpec((s * s, C, tile_m), lambda m: (0, 0, m)),
        pl.BlockSpec((s * s, C, HALO), lambda m: (0, 0, (m + 1) * mult)),
        _const_block_spec((kh * kw, C_out, C), lambda m: (0, 0, 0)),
        _const_block_spec((C_out, 1), lambda m: (0, 0)),
        _const_block_spec((output_caps, C_out), lambda m: (0, 0)),
        _const_block_spec((C_out, output_caps), lambda m: (0, 0)),
    ]

    # VMEM working set (bytes); raise the scoped limit only when actually needed.
    vmem_need = (2 * (s * s * C * (tile_m + HALO)) * 2   # xs tile+halo, double-buffered
                 + kh * kw * C_out * C * 2               # weights (single-buffered)
                 + 2 * C_out * tile_m * 2                # out tile, double-buffered
                 + C * (tile_m + HALO) * 2               # win scratch
                 + 2 * C_out * tile_m * 4)               # f32 accumulator temporaries
    cp_kwargs = dict(dimension_semantics=("parallel",))
    if vmem_need > 24 * 2 ** 20:
        # Real capsnet shapes: stay well under v7x's 64 MiB physical VMEM;
        # v5e/v6e have 128 MiB so this is conservative there.
        cp_kwargs["vmem_limit_bytes"] = int(min(2 * vmem_need, 96 * 2 ** 20))

    cost = pl.CostEstimate(
        flops=2 * M_pad * (C * kh * kw) * C_out + 4 * M_pad * C_out * output_caps,
        transcendentals=2 * M_pad * output_caps,
        bytes_accessed=int(xs.size * 2 * (1.0 + HALO / tile_m) + w_k.size * 2
                           + b2d.size * 4 + g_sum.size * 2 + g_bcast.size * 4
                           + C_out * M_pad * 2),
    )

    out_t = pl.pallas_call(
        kernel,
        out_shape=jax.ShapeDtypeStruct((C_out, M_pad), jnp.bfloat16),
        grid_spec=pltpu.PrefetchScalarGridSpec(
            num_scalar_prefetch=0,
            grid=(grid_m,),
            in_specs=in_specs,
            out_specs=pl.BlockSpec((C_out, tile_m), lambda m: (0, m)),
            scratch_shapes=[pltpu.VMEM((C, tile_m + HALO), jnp.bfloat16)],
        ),
        compiler_params=pltpu.CompilerParams(**cp_kwargs),
        cost_estimate=cost,
    )(xs, xs, w_k, b2d, g_sum, g_bcast)

    # --- epilogue: drop pad / invalid phase columns, exact PyTorch view/permute ---
    # TODO(synk): if the consumer accepts bf16 and/or the (caps, dim, N, OH, OW)
    # layout, fold this permute + f32 cast into it to save an HBM round trip.
    out_t = out_t[:, :Mfull].reshape(C_out, N, Hs, Ws)[:, :, :OH, :OW]
    out_t = out_t.reshape(output_caps, output_dim, N, OH, OW)
    out_t = out_t.transpose(2, 0, 3, 4, 1)               # (N, caps, OH, OW, dim)
    return out_t.reshape(N, output_caps * OH * OW, output_dim).astype(jnp.float32)


def _reference(x, weight, bias, output_caps, output_dim, stride,
               conv_dtype=jnp.float32):
    # pure-JAX reference replicating the PyTorch forward (optionally with bf16
    # conv operands + f32 accumulation to precision-match the kernel's MXU path)
    out = jax.lax.conv_general_dilated(
        x.astype(conv_dtype), weight.astype(conv_dtype),
        window_strides=(stride, stride), padding="VALID",
        dimension_numbers=("NCHW", "OIHW", "NCHW"),
        preferred_element_type=jnp.float32)
    out = out + bias.astype(jnp.float32)[None, :, None, None]
    N, Cc, Hh, Ww = out.shape
    out = out.reshape(N, output_caps, output_dim, Hh, Ww)
    out = out.transpose(0, 1, 3, 4, 2).reshape(N, -1, output_dim)
    l2 = jnp.sum(out * out, axis=2)
    l = jnp.sqrt(l2)
    scale = (l2 / (1.0 + l2) / l)[:, :, None]
    return out * scale


if __name__ == "__main__":
    # small, module-consistent shapes
    N, C_in, H, W = 2, 4, 16, 16
    output_caps, output_dim = 8, 4
    kernel_size, stride = 3, 2
    C_out = output_caps * output_dim

    key = jax.random.PRNGKey(0)
    kx, kw_, kb = jax.random.split(key, 3)
    x = jax.random.normal(kx, (N, C_in, H, W), dtype=jnp.float32)
    fan_in = C_in * kernel_size * kernel_size
    weight = jax.random.normal(kw_, (C_out, C_in, kernel_size, kernel_size),
                               dtype=jnp.float32) * (1.0 / jnp.sqrt(fan_in))
    bias = jax.random.uniform(kb, (C_out,), dtype=jnp.float32,
                              minval=-0.1, maxval=0.1)

    fwd = jax.jit(functools.partial(
        primary_caps_forward, output_caps=output_caps, output_dim=output_dim,
        kernel_size=kernel_size, stride=stride))
    out = jax.block_until_ready(fwd(x, weight, bias))

    # check vs precision-matched reference (bf16 MXU operands, f32 accumulation)
    ref_bf16 = _reference(x, weight, bias, output_caps, output_dim, stride,
                          conv_dtype=jnp.bfloat16)
    # loose check vs full-f32 PyTorch-equivalent reference
    ref_f32 = _reference(x, weight, bias, output_caps, output_dim, stride,
                         conv_dtype=jnp.float32)

    assert out.shape == ref_f32.shape, (out.shape, ref_f32.shape)
    assert bool(jnp.all(jnp.isfinite(out)))
    err_matched = float(jnp.max(jnp.abs(out - ref_bf16)))
    err_full = float(jnp.max(jnp.abs(out - ref_f32)))
    assert jnp.allclose(out, ref_bf16, rtol=2e-2, atol=2e-2), err_matched
    assert jnp.allclose(out, ref_f32, rtol=6e-2, atol=6e-2), err_full

    print("KERNEL_OK")
</pallas_src>

<mosaic_0001>
module attributes {stable_mosaic.version = 11 : i64} {
  func.func @kernel(%arg0: i32, %arg1: memref<4x4x128xbf16, #tpu.memory_space<vmem>>, %arg2: memref<4x4x128xbf16, #tpu.memory_space<vmem>>, %arg3: memref<9x32x4xbf16, #tpu.memory_space<vmem>>, %arg4: memref<32x1xf32, #tpu.memory_space<vmem>>, %arg5: memref<8x32xbf16, #tpu.memory_space<vmem>>, %arg6: memref<32x8xf32, #tpu.memory_space<vmem>>, %arg7: memref<32x128xbf16, #tpu.memory_space<vmem>>, %arg8: memref<4x256xbf16, #tpu.memory_space<vmem>>) attributes {dimension_semantics = [#tpu.dimension_semantics<parallel>], iteration_bounds = array<i64: 1>, scalar_prefetch = 0 : i64, scratch_operands = 1 : i64, tpu.core_type = #tpu.core_type<tc>, window_params = [{transform_indices = @transform_0, window_bounds = array<i64: 4, 4, 128>}, {transform_indices = @transform_1, window_bounds = array<i64: 4, 4, 128>}, {pipeline_mode = #tpu.pipeline_mode<synchronous>, transform_indices = @transform_2, window_bounds = array<i64: 9, 32, 4>}, {pipeline_mode = #tpu.pipeline_mode<synchronous>, transform_indices = @transform_3, window_bounds = array<i64: 32, 1>}, {pipeline_mode = #tpu.pipeline_mode<synchronous>, transform_indices = @transform_4, window_bounds = array<i64: 8, 32>}, {pipeline_mode = #tpu.pipeline_mode<synchronous>, transform_indices = @transform_5, window_bounds = array<i64: 32, 8>}, {transform_indices = @transform_6, window_bounds = array<i64: 32, 128>}]} {
    %c0 = arith.constant 0 : index
    %c0_0 = arith.constant 0 : index
    %c0_1 = arith.constant 0 : index
    %0 = vector.load %arg1[%c0, %c0_0, %c0_1] : memref<4x4x128xbf16, #tpu.memory_space<vmem>>, vector<1x4x128xbf16>
    %1 = vector.shape_cast %0 : vector<1x4x128xbf16> to vector<4x128xbf16>
    %c0_2 = arith.constant 0 : index
    %c0_3 = arith.constant 0 : index
    %2 = vector.load %arg8[%c0_2, %c0_3] : memref<4x256xbf16, #tpu.memory_space<vmem>>, vector<4x128xbf16>
    tpu.vector_store %arg8[%c0_2, %c0_3], %1 {strides = array<i32>} : memref<4x256xbf16, #tpu.memory_space<vmem>>, vector<4x128xbf16>,
    %c0_4 = arith.constant 0 : index
    %c0_5 = arith.constant 0 : index
    %c0_6 = arith.constant 0 : index
    %3 = vector.load %arg2[%c0_4, %c0_5, %c0_6] : memref<4x4x128xbf16, #tpu.memory_space<vmem>>, vector<1x4x128xbf16>
    %4 = vector.shape_cast %3 : vector<1x4x128xbf16> to vector<4x128xbf16>
    %c0_7 = arith.constant 0 : index
    %c128 = arith.constant 128 : index
    %5 = vector.load %arg8[%c0_7, %c128] : memref<4x256xbf16, #tpu.memory_space<vmem>>, vector<4x128xbf16>
    tpu.vector_store %arg8[%c0_7, %c128], %4 {strides = array<i32>} : memref<4x256xbf16, #tpu.memory_space<vmem>>, vector<4x128xbf16>,
    %c0_8 = arith.constant 0 : index
    %c0_9 = arith.constant 0 : index
    %6 = vector.load %arg8[%c0_8, %c0_9] : memref<4x256xbf16, #tpu.memory_space<vmem>>, vector<4x128xbf16>
    %c0_10 = arith.constant 0 : index
    %c0_11 = arith.constant 0 : index
    %c0_12 = arith.constant 0 : index
    %7 = vector.load %arg3[%c0_10, %c0_11, %c0_12] : memref<9x32x4xbf16, #tpu.memory_space<vmem>>, vector<1x32x4xbf16>
    %8 = vector.shape_cast %7 : vector<1x32x4xbf16> to vector<32x4xbf16>
    %cst = arith.constant dense<0.000000e+00> : vector<32x128xf32>
    %9 = tpu.matmul %8, %6, %cst {dimension_numbers = #tpu.dot_dimension_numbers<[1], [0], [0], [1], [0, 0, 1, 1], [], []>} : vector<32x4xbf16>, vector<4x128xbf16>, vector<32x128xf32> -> vector<32x128xf32>
    %c0_13 = arith.constant 0 : index
    %c1 = arith.constant 1 : index
    %10 = vector.load %arg8[%c0_13, %c1] : memref<4x256xbf16, #tpu.memory_space<vmem>>, vector<4x128xbf16>
    %c2 = arith.constant 2 : index
    %c0_14 = arith.constant 0 : index
    %c0_15 = arith.constant 0 : index
    %11 = vector.load %arg3[%c2, %c0_14, %c0_15] : memref<9x32x4xbf16, #tpu.memory_space<vmem>>, vector<1x32x4xbf16>
    %12 = vector.shape_cast %11 : vector<1x32x4xbf16> to vector<32x4xbf16>
    %cst_16 = arith.constant dense<0.000000e+00> : vector<32x128xf32>
    %13 = tpu.matmul %12, %10, %cst_16 {dimension_numbers = #tpu.dot_dimension_numbers<[1], [0], [0], [1], [0, 0, 1, 1], [], []>} : vector<32x4xbf16>, vector<4x128xbf16>, vector<32x128xf32> -> vector<32x128xf32>
    %14 = arith.addf %9, %13 : vector<32x128xf32>
    %c0_17 = arith.constant 0 : index
    %c8 = arith.constant 8 : index
    %15 = vector.load %arg8[%c0_17, %c8] : memref<4x256xbf16, #tpu.memory_space<vmem>>, vector<4x128xbf16>
    %c6 = arith.constant 6 : index
    %c0_18 = arith.constant 0 : index
    %c0_19 = arith.constant 0 : index
    %16 = vector.load %arg3[%c6, %c0_18, %c0_19] : memref<9x32x4xbf16, #tpu.memory_space<vmem>>, vector<1x32x4xbf16>
    %17 = vector.shape_cast %16 : vector<1x32x4xbf16> to vector<32x4xbf16>
    %cst_20 = arith.constant dense<0.000000e+00> : vector<32x128xf32>
    %18 = tpu.matmul %17, %15, %cst_20 {dimension_numbers = #tpu.dot_dimension_numbers<[1], [0], [0], [1], [0, 0, 1, 1], [], []>} : vector<32x4xbf16>, vector<4x128xbf16>, vector<32x128xf32> -> vector<32x128xf32>
    %19 = arith.addf %14, %18 : vector<32x128xf32>
    %c0_21 = arith.constant 0 : index
    %c9 = arith.constant 9 : index
    %20 = vector.load %arg8[%c0_21, %c9] : memref<4x256xbf16, #tpu.memory_space<vmem>>, vector<4x128xbf16>
    %c8_22 = arith.constant 8 : index
    %c0_23 = arith.constant 0 : index
    %c0_24 = arith.constant 0 : index
    %21 = vector.load %arg3[%c8_22, %c0_23, %c0_24] : memref<9x32x4xbf16, #tpu.memory_space<vmem>>, vector<1x32x4xbf16>
    %22 = vector.shape_cast %21 : vector<1x32x4xbf16> to vector<32x4xbf16>
    %cst_25 = arith.constant dense<0.000000e+00> : vector<32x128xf32>
    %23 = tpu.matmul %22, %20, %cst_25 {dimension_numbers = #tpu.dot_dimension_numbers<[1], [0], [0], [1], [0, 0, 1, 1], [], []>} : vector<32x4xbf16>, vector<4x128xbf16>, vector<32x128xf32> -> vector<32x128xf32>
    %24 = arith.addf %19, %23 : vector<32x128xf32>
    %c1_26 = arith.constant 1 : index
    %c0_27 = arith.constant 0 : index
    %c0_28 = arith.constant 0 : index
    %25 = vector.load %arg1[%c1_26, %c0_27, %c0_28] : memref<4x4x128xbf16, #tpu.memory_space<vmem>>, vector<1x4x128xbf16>
    %26 = vector.shape_cast %25 : vector<1x4x128xbf16> to vector<4x128xbf16>
    %c0_29 = arith.constant 0 : index
    %c0_30 = arith.constant 0 : index
    %27 = vector.load %arg8[%c0_29, %c0_30] : memref<4x256xbf16, #tpu.memory_space<vmem>>, vector<4x128xbf16>
    tpu.vector_store %arg8[%c0_29, %c0_30], %26 {strides = array<i32>} : memref<4x256xbf16, #tpu.memory_space<vmem>>, vector<4x128xbf16>,
    %c1_31 = arith.constant 1 : index
    %c0_32 = arith.constant 0 : index
    %c0_33 = arith.constant 0 : index
    %28 = vector.load %arg2[%c1_31, %c0_32, %c0_33] : memref<4x4x128xbf16, #tpu.memory_space<vmem>>, vector<1x4x128xbf16>
    %29 = vector.shape_cast %28 : vector<1x4x128xbf16> to vector<4x128xbf16>
    %c0_34 = arith.constant 0 : index
    %c128_35 = arith.constant 128 : index
    %30 = vector.load %arg8[%c0_34, %c128_35] : memref<4x256xbf16, #tpu.memory_space<vmem>>, vector<4x128xbf16>
    tpu.vector_store %arg8[%c0_34, %c128_35], %29 {strides = array<i32>} : memref<4x256xbf16, #tpu.memory_space<vmem>>, vector<4x128xbf16>,
    %c0_36 = arith.constant 0 : index
    %c0_37 = arith.constant 0 : index
    %31 = vector.load %arg8[%c0_36, %c0_37] : memref<4x256xbf16, #tpu.memory_space<vmem>>, vector<4x128xbf16>
    %c1_38 = arith.constant 1 : index
    %c0_39 = arith.constant 0 : index
    %c0_40 = arith.constant 0 : index
    %32 = vector.load %arg3[%c1_38, %c0_39, %c0_40] : memref<9x32x4xbf16, #tpu.memory_space<vmem>>, vector<1x32x4xbf16>
    %33 = vector.shape_cast %32 : vector<1x32x4xbf16> to vector<32x4xbf16>
    %cst_41 = arith.constant dense<0.000000e+00> : vector<32x128xf32>
    %34 = tpu.matmul %33, %31, %cst_41 {dimension_numbers = #tpu.dot_dimension_numbers<[1], [0], [0], [1], [0, 0, 1, 1], [], []>} : vector<32x4xbf16>, vector<4x128xbf16>, vector<32x128xf32> -> vector<32x128xf32>
    %35 = arith.addf %24, %34 : vector<32x128xf32>
    %c0_42 = arith.constant 0 : index
    %c8_43 = arith.constant 8 : index
    %36 = vector.load %arg8[%c0_42, %c8_43] : memref<4x256xbf16, #tpu.memory_space<vmem>>, vector<4x128xbf16>
    %c7 = arith.constant 7 : index
    %c0_44 = arith.constant 0 : index
    %c0_45 = arith.constant 0 : index
    %37 = vector.load %arg3[%c7, %c0_44, %c0_45] : memref<9x32x4xbf16, #tpu.memory_space<vmem>>, vector<1x32x4xbf16>
    %38 = vector.shape_cast %37 : vector<1x32x4xbf16> to vector<32x4xbf16>
    %cst_46 = arith.constant dense<0.000000e+00> : vector<32x128xf32>
    %39 = tpu.matmul %38, %36, %cst_46 {dimension_numbers = #tpu.dot_dimension_numbers<[1], [0], [0], [1], [0, 0, 1, 1], [], []>} : vector<32x4xbf16>, vector<4x128xbf16>, vector<32x128xf32> -> vector<32x128xf32>
    %40 = arith.addf %35, %39 : vector<32x128xf32>
    %c2_47 = arith.constant 2 : index
    %c0_48 = arith.constant 0 : index
    %c0_49 = arith.constant 0 : index
    %41 = vector.load %arg1[%c2_47, %c0_48, %c0_49] : memref<4x4x128xbf16, #tpu.memory_space<vmem>>, vector<1x4x128xbf16>
    %42 = vector.shape_cast %41 : vector<1x4x128xbf16> to vector<4x128xbf16>
    %c0_50 = arith.constant 0 : index
    %c0_51 = arith.constant 0 : index
    %43 = vector.load %arg8[%c0_50, %c0_51] : memref<4x256xbf16, #tpu.memory_space<vmem>>, vector<4x128xbf16>
    tpu.vector_store %arg8[%c0_50, %c0_51], %42 {strides = array<i32>} : memref<4x256xbf16, #tpu.memory_space<vmem>>, vector<4x128xbf16>,
    %c2_52 = arith.constant 2 : index
    %c0_53 = arith.constant 0 : index
    %c0_54 = arith.constant 0 : index
    %44 = vector.load %arg2[%c2_52, %c0_53, %c0_54] : memref<4x4x128xbf16, #tpu.memory_space<vmem>>, vector<1x4x128xbf16>
    %45 = vector.shape_cast %44 : vector<1x4x128xbf16> to vector<4x128xbf16>
    %c0_55 = arith.constant 0 : index
    %c128_56 = arith.constant 128 : index
    %46 = vector.load %arg8[%c0_55, %c128_56] : memref<4x256xbf16, #tpu.memory_space<vmem>>, vector<4x128xbf16>
    tpu.vector_store %arg8[%c0_55, %c128_56], %45 {strides = array<i32>} : memref<4x256xbf16, #tpu.memory_space<vmem>>, vector<4x128xbf16>,
    %c0_57 = arith.constant 0 : index
    %c0_58 = arith.constant 0 : index
    %47 = vector.load %arg8[%c0_57, %c0_58] : memref<4x256xbf16, #tpu.memory_space<vmem>>, vector<4x128xbf16>
    %c3 = arith.constant 3 : index
    %c0_59 = arith.constant 0 : index
    %c0_60 = arith.constant 0 : index
    %48 = vector.load %arg3[%c3, %c0_59, %c0_60] : memref<9x32x4xbf16, #tpu.memory_space<vmem>>, vector<1x32x4xbf16>
    %49 = vector.shape_cast %48 : vector<1x32x4xbf16> to vector<32x4xbf16>
    %cst_61 = arith.constant dense<0.000000e+00> : vector<32x128xf32>
    %50 = tpu.matmul %49, %47, %cst_61 {dimension_numbers = #tpu.dot_dimension_numbers<[1], [0], [0], [1], [0, 0, 1, 1], [], []>} : vector<32x4xbf16>, vector<4x128xbf16>, vector<32x128xf32> -> vector<32x128xf32>
    %51 = arith.addf %40, %50 : vector<32x128xf32>
    %c0_62 = arith.constant 0 : index
    %c1_63 = arith.constant 1 : index
    %52 = vector.load %arg8[%c0_62, %c1_63] : memref<4x256xbf16, #tpu.memory_space<vmem>>, vector<4x128xbf16>
    %c5 = arith.constant 5 : index
    %c0_64 = arith.constant 0 : index
    %c0_65 = arith.constant 0 : index
    %53 = vector.load %arg3[%c5, %c0_64, %c0_65] : memref<9x32x4xbf16, #tpu.memory_space<vmem>>, vector<1x32x4xbf16>
    %54 = vector.shape_cast %53 : vector<1x32x4xbf16> to vector<32x4xbf16>
    %cst_66 = arith.constant dense<0.000000e+00> : vector<32x128xf32>
    %55 = tpu.matmul %54, %52, %cst_66 {dimension_numbers = #tpu.dot_dimension_numbers<[1], [0], [0], [1], [0, 0, 1, 1], [], []>} : vector<32x4xbf16>, vector<4x128xbf16>, vector<32x128xf32> -> vector<32x128xf32>
    %56 = arith.addf %51, %55 : vector<32x128xf32>
    %c3_67 = arith.constant 3 : index
    %c0_68 = arith.constant 0 : index
    %c0_69 = arith.constant 0 : index
    %57 = vector.load %arg1[%c3_67, %c0_68, %c0_69] : memref<4x4x128xbf16, #tpu.memory_space<vmem>>, vector<1x4x128xbf16>
    %58 = vector.shape_cast %57 : vector<1x4x128xbf16> to vector<4x128xbf16>
    %c0_70 = arith.constant 0 : index
    %c0_71 = arith.constant 0 : index
    %59 = vector.load %arg8[%c0_70, %c0_71] : memref<4x256xbf16, #tpu.memory_space<vmem>>, vector<4x128xbf16>
    tpu.vector_store %arg8[%c0_70, %c0_71], %58 {strides = array<i32>} : memref<4x256xbf16, #tpu.memory_space<vmem>>, vector<4x128xbf16>,
    %c3_72 = arith.constant 3 : index
    %c0_73 = arith.constant 0 : index
    %c0_74 = arith.constant 0 : index
    %60 = vector.load %arg2[%c3_72, %c0_73, %c0_74] : memref<4x4x128xbf16, #tpu.memory_space<vmem>>, vector<1x4x128xbf16>
    %61 = vector.shape_cast %60 : vector<1x4x128xbf16> to vector<4x128xbf16>
    %c0_75 = arith.constant 0 : index
    %c128_76 = arith.constant 128 : index
    %62 = vector.load %arg8[%c0_75, %c128_76] : memref<4x256xbf16, #tpu.memory_space<vmem>>, vector<4x128xbf16>
    tpu.vector_store %arg8[%c0_75, %c128_76], %61 {strides = array<i32>} : memref<4x256xbf16, #tpu.memory_space<vmem>>, vector<4x128xbf16>,
    %c0_77 = arith.constant 0 : index
    %c0_78 = arith.constant 0 : index
    %63 = vector.load %arg8[%c0_77, %c0_78] : memref<4x256xbf16, #tpu.memory_space<vmem>>, vector<4x128xbf16>
    %c4 = arith.constant 4 : index
    %c0_79 = arith.constant 0 : index
    %c0_80 = arith.constant 0 : index
    %64 = vector.load %arg3[%c4, %c0_79, %c0_80] : memref<9x32x4xbf16, #tpu.memory_space<vmem>>, vector<1x32x4xbf16>
    %65 = vector.shape_cast %64 : vector<1x32x4xbf16> to vector<32x4xbf16>
    %cst_81 = arith.constant dense<0.000000e+00> : vector<32x128xf32>
    %66 = tpu.matmul %65, %63, %cst_81 {dimension_numbers = #tpu.dot_dimension_numbers<[1], [0], [0], [1], [0, 0, 1, 1], [], []>} : vector<32x4xbf16>, vector<4x128xbf16>, vector<32x128xf32> -> vector<32x128xf32>
    %67 = arith.addf %56, %66 : vector<32x128xf32>
    %c0_82 = arith.constant 0 : index
    %c0_83 = arith.constant 0 : index
    %68 = vector.load %arg4[%c0_82, %c0_83] : memref<32x1xf32, #tpu.memory_space<vmem>>, vector<32x1xf32>
    %69 = vector.broadcast %68 : vector<32x1xf32> to vector<32x128xf32>
    %70 = arith.addf %67, %69 : vector<32x128xf32>
    %71 = arith.truncf %70 : vector<32x128xf32> to vector<32x128xbf16>
    %c0_84 = arith.constant 0 : index
    %c0_85 = arith.constant 0 : index
    %72 = vector.load %arg5[%c0_84, %c0_85] : memref<8x32xbf16, #tpu.memory_space<vmem>>, vector<8x32xbf16>
    %73 = arith.mulf %71, %71 : vector<32x128xbf16>
    %cst_86 = arith.constant dense<0.000000e+00> : vector<8x128xf32>
    %74 = tpu.matmul %72, %73, %cst_86 {dimension_numbers = #tpu.dot_dimension_numbers<[1], [0], [0], [1], [0, 0, 1, 1], [], []>} : vector<8x32xbf16>, vector<32x128xbf16>, vector<8x128xf32> -> vector<8x128xf32>
    %75 = math.sqrt %74 : vector<8x128xf32>
    %cst_87 = arith.constant 1.000000e+00 : f32
    %76 = vector.broadcast %cst_87 : f32 to vector<8x128xf32>
    %77 = arith.addf %76, %74 : vector<8x128xf32>
    %78 = tpu.reciprocal %77 {approx = true} : vector<8x128xf32> -> vector<8x128xf32>
    %79 = arith.mulf %75, %78 : vector<8x128xf32>
    %c0_88 = arith.constant 0 : index
    %c0_89 = arith.constant 0 : index
    %80 = vector.load %arg6[%c0_88, %c0_89] : memref<32x8xf32, #tpu.memory_space<vmem>>, vector<32x8xf32>
    %cst_90 = arith.constant dense<0.000000e+00> : vector<32x128xf32>
    %81 = tpu.matmul %80, %79, %cst_90 {dimension_numbers = #tpu.dot_dimension_numbers<[1], [0], [0], [1], [0, 0, 1, 1], [], []>} : vector<32x8xf32>, vector<8x128xf32>, vector<32x128xf32> -> vector<32x128xf32>
    %82 = arith.mulf %70, %81 : vector<32x128xf32>
    %83 = arith.truncf %82 : vector<32x128xf32> to vector<32x128xbf16>
    %c0_91 = arith.constant 0 : index
    %c0_92 = arith.constant 0 : index
    %84 = vector.load %arg7[%c0_91, %c0_92] : memref<32x128xbf16, #tpu.memory_space<vmem>>, vector<32x128xbf16>
    tpu.vector_store %arg7[%c0_91, %c0_92], %83 {strides = array<i32>} : memref<32x128xbf16, #tpu.memory_space<vmem>>, vector<32x128xbf16>,
    return
  }
  func.func @transform_0(%arg0: i32) -> (i32, i32, i32) {
    %c0_i32 = arith.constant 0 : i32
    %c0_i32_0 = arith.constant 0 : i32
    %c0_i32_1 = arith.constant 0 : i32
    return %c0_i32, %c0_i32_0, %arg0 : i32, i32, i32
  }
  func.func @transform_1(%arg0: i32) -> (i32, i32, i32) {
    %c1_i32 = arith.constant 1 : i32
    %0 = arith.addi %arg0, %c1_i32 : i32
    %c1_i32_0 = arith.constant 1 : i32
    %1 = arith.muli %0, %c1_i32_0 : i32
    %c0_i32 = arith.constant 0 : i32
    %c0_i32_1 = arith.constant 0 : i32
    %c0_i32_2 = arith.constant 0 : i32
    return %c0_i32, %c0_i32_1, %1 : i32, i32, i32
  }
  func.func @transform_2(%arg0: i32) -> (i32, i32, i32) {
    %c0_i32 = arith.constant 0 : i32
    %c0_i32_0 = arith.constant 0 : i32
    %c0_i32_1 = arith.constant 0 : i32
    %c0_i32_2 = arith.constant 0 : i32
    return %c0_i32, %c0_i32_0, %c0_i32_1 : i32, i32, i32
  }
  func.func @transform_3(%arg0: i32) -> (i32, i32) {
    %c0_i32 = arith.constant 0 : i32
    %c0_i32_0 = arith.constant 0 : i32
    %c0_i32_1 = arith.constant 0 : i32
    return %c0_i32, %c0_i32_0 : i32, i32
  }
  func.func @transform_4(%arg0: i32) -> (i32, i32) {
    %c0_i32 = arith.constant 0 : i32
    %c0_i32_0 = arith.constant 0 : i32
    %c0_i32_1 = arith.constant 0 : i32
    return %c0_i32, %c0_i32_0 : i32, i32
  }
  func.func @transform_5(%arg0: i32) -> (i32, i32) {
    %c0_i32 = arith.constant 0 : i32
    %c0_i32_0 = arith.constant 0 : i32
    %c0_i32_1 = arith.constant 0 : i32
    return %c0_i32, %c0_i32_0 : i32, i32
  }
  func.func @transform_6(%arg0: i32) -> (i32, i32) {
    %c0_i32 = arith.constant 0 : i32
    %c0_i32_0 = arith.constant 0 : i32
    return %c0_i32, %arg0 : i32, i32
  }
}

</mosaic_0001>

<bundles_post_ra>
// kernel: primary_caps_forward.1
= control target key start
LH: loop header
LB: loop body
LE: loop exit
PB: predicated region body
PF: predicated region fallthrough
CT: control target
= control target key end

     0   :  { %vm174_vm0 = vcmask 31744   ;;  %s1427_s13 = smov 119   ;;  %s1428_s15 = smov 120   ;;  %v1430_v29 = vmov 0   ;;  %vm424_vm1 = vcmask 973824   ;;  %vm181_vm2 = vcmask 1041408   ;;  %s1631_s0 = inlined_call_operand.vmem [shape: bf16[4,4,256], index: 0, kind: input, shape index: {}, may-alias: {0,1}]   ;;  %s1632_s1 = inlined_call_operand.vmem [shape: bf16[4,4,256], index: 1, kind: input, shape index: {}, may-alias: {0,1}]   ;;  %s1633_s2 = inlined_call_operand.vmem [shape: bf16[9,32,4], index: 2, kind: input, shape index: {}]   ;;  %s1634_s3 = inlined_call_operand.vmem [shape: f32[32,1], index: 3, kind: input, shape index: {}]   ;;  %s1635_s4 = inlined_call_operand.vmem [shape: bf16[8,32], index: 4, kind: input, shape index: {}]   ;;  %s1636_s5 = inlined_call_operand.vmem [shape: f32[32,8], index: 5, kind: input, shape index: {}]   ;;  %s1637_s6 = inlined_call_operand.vmem [shape: bf16[32,128], index: 6, kind: output, shape index: {}]  }
   0x1   :  { %v28_v0 = vld [vmem:[%s1631_s0] sm:$0x3]  ;;  %v30_v1 = vld [vmem:[%s1631_s0 + $0x4] sm:$0x3]  ;;  %v1150_v2 = vld [vmem:[%s1632_s1 + $0x2] sm:$0x3]  ;;  %1404 = vset.pattern.permute.xlu1 %v1430_v29  ;;  %1403 = vset.pattern.permute.xlu0 %v1430_v29 }
   0x2   :  { %29 = vst [vmem:[#allocation3] sm:$0x3] %v28_v0  ;;  %31 = vst [vmem:[#allocation3 + $0x2] sm:$0x3] %v30_v1  ;;  %v32_v3 = vld [vmem:[%s1631_s0 + $0x8] sm:$0x3] }
   0x3   :  { %85 = vst [vmem:[#allocation4] sm:$0x3] %v1150_v2  ;;  %v1151_v4 = vld [vmem:[%s1632_s1 + $0x6] sm:$0x3]  ;;  %33 = vst [vmem:[#allocation3 + $0x4] sm:$0x3] %v32_v3 }
   0x4   :  { %87 = vst [vmem:[#allocation4 + $0x2] sm:$0x3] %v1151_v4  ;;  %v1152_v5 = vld [vmem:[%s1632_s1 + $0xa] sm:$0x3]  ;;  %v1153_v6 = vld [vmem:[%s1632_s1 + $0xe] sm:$0x3] }
   0x5   :  { %89 = vst [vmem:[#allocation4 + $0x4] sm:$0x3] %v1152_v5  ;;  %91 = vst [vmem:[#allocation4 + $0x6] sm:$0x3] %v1153_v6  ;;  %v1405_v9 = vld [vmem:[%s1633_s2 + $0x80] sm:$0xff]   ;;  %s1429_s16 = smov 127  }
   0x6   :  { %1306 = vmatprep.mubr.msk.bf16.mxu0 %vm174_vm0, %v1405_v9  ;;  %v1407_v17 = vld [vmem:[%s1633_s2 + $0x20] sm:$0xff]   ;;  %v34_v24 = vld [vmem:[%s1631_s0 + $0xc] sm:$0x3]  ;;  %v926_v30 = vld [vmem:[%s1634_s3 + $0x10] sm:$0xff]  ;;  %vm331_vm3 = vcmask 982016   ;;  %vm172_vm4 = vcmask 1039360  }
   0x7   :  { %1288 = vmatprep.mubr.msk.bf16.mxu1 %vm174_vm0, %v1407_v17  ;;  %35 = vst [vmem:[#allocation3 + $0x6] sm:$0x3] %v34_v24  ;;  %v925_v27 = vld [vmem:[%s1634_s3 + $0x8] sm:$0xff]  ;;  %v924_v28 = vld [vmem:[%s1634_s3] sm:$0xff]  ;;  %v927_v31 = vld [vmem:[%s1634_s3 + $0x18] sm:$0xff]  ;;  %v1431_v9 = vmov 0.0  }
   0x8   :  { %v1406_v36 = vld [vmem:[%s1633_s2 + $0x88] sm:$0xff]   ;;  %v1408_v37 = vld [vmem:[%s1633_s2 + $0x10] sm:$0xff]   ;;  %v1410_v48 = vld [vmem:[%s1633_s2 + $0x18] sm:$0xff]   ;;  %vm1432_vm5 = vmmov 0   ;;  %vm957_vm6 = vcmask 261120   ;;  %vm1015_vm7 = vcmask 64512  }
   0x9   :  { %v134_v7 = vld [vmem:[#allocation3] sm:$0x3]  ;;  %v489_v10 = vld [vmem:[#allocation3 + $0x2] sm:$0x3]  ;;  %v1409_v47 = vld [vmem:[%s1633_s2 + $0x28] sm:$0xff]  }
   0xa   :  { %v136_v8 = vld [vmem:[#allocation4] sm:$0x3]  ;;  %135 = vst [vmem:[#allocation2] sm:$0x3] %v134_v7  ;;  %v665_v15 = vld [vmem:[#allocation3 + $0x4] sm:$0x3] }
   0xb   :  { %137 = vst [vmem:[#allocation2 + $0x2] sm:$0x3] %v136_v8  ;;  %v492_v11 = vld [vmem:[#allocation4 + $0x2] sm:$0x3]  ;;  %v1411_v51 = vld [vmem:[%s1633_s2] sm:$0xff]   ;;  %v1412_v52 = vld [vmem:[%s1633_s2 + $0x70] sm:$0xff]  }
   0xc   :  { %v668_v16 = vld [vmem:[#allocation4 + $0x4] sm:$0x3]  ;;  %v844_v21 = vld [vmem:[#allocation4 + $0x6] sm:$0x3]  ;;  %v1413_v57 = vld [vmem:[%s1633_s2 + $0x8] sm:$0xff]  }
   0xd   :  { %v1414_v58 = vld [vmem:[%s1633_s2 + $0x78] sm:$0xff]   ;;  %v1415_v61 = vld [vmem:[%s1633_s2 + $0x60] sm:$0xff]   ;;  %v1416_v62 = vld [vmem:[%s1633_s2 + $0x30] sm:$0xff]  }
   0xe   :  { %v841_v26 = vld [vmem:[#allocation3 + $0x6] sm:$0x3]  ;;  %v1418_v1 = vld [vmem:[%s1633_s2 + $0x38] sm:$0xff]   ;;  %v1419_v2 = vld [vmem:[%s1633_s2 + $0x50] sm:$0xff]  }
   0xf   :  { %v1417_v0 = vld [vmem:[%s1633_s2 + $0x68] sm:$0xff]   ;;  %v1420_v5 = vld [vmem:[%s1633_s2 + $0x58] sm:$0xff]   ;;  %v1421_v6 = vld [vmem:[%s1633_s2 + $0x40] sm:$0xff]  }
  0x10   :  { %v1422_v8 = vld [vmem:[%s1633_s2 + $0x48] sm:$0xff]  }
  0x11   :  { %v1493_v13 = vld [vmem:[#allocation2] sm:$0x3] }
  0x12   :  { %v1182_v12 = vld.sshfl [vmem:[#allocation2] sm:$0x33 pattern:$0x76325410]  ;;  %v251_v50 = vsel %vm181_vm2, %v1493_v13, 0 }
  0x13   :  { %420 = vrot.lane.b32.xlu0 %v1182_v12, %s1427_s13  ;;  %490 = vst [vmem:[#allocation2] sm:$0x3] %v489_v10  ;;  %v419_v14 = vcombine.high %v1182_v12, %v1182_v12  ;;  %493 = vst [vmem:[#allocation2 + $0x2] sm:$0x3] %v492_v11 }
  0x17   :  { %422 = vrot.lane.b32.xlu0 %v419_v14, %s1427_s13 }
  0x1a   :  { %v1199_v18 = vld.sshfl [vmem:[#allocation2] sm:$0x33 pattern:$0x76325410] }
  0x1b   :  { %v494_v19 = vld [vmem:[#allocation2] sm:$0x3]  ;;  %597 = vrot.lane.b32.xlu1 %v1199_v18, %s1428_s15  ;;  %669 = vst [vmem:[#allocation2 + $0x2] sm:$0x3] %v668_v16  ;;  %v596_v20 = vcombine.high %v1199_v18, %v1199_v18  ;;  %168 = vrot.lane.b32.xlu0 %v1182_v12, %s1429_s16 }
  0x1c   :  { %666 = vst [vmem:[#allocation2] sm:$0x3] %v665_v15  ;;  %v517_v39 = vsel %vm181_vm2, %v494_v19, 0 }
  0x1f   :  { %599 = vrot.lane.b32.xlu1 %v596_v20, %s1428_s15 }
  0x23   :  { %v1216_v22 = vld.sshfl [vmem:[#allocation2] sm:$0x33 pattern:$0x76325410]  ;;  %170 = vrot.lane.b32.xlu1 %v419_v14, %s1429_s16 }
  0x24   :  { %773 = vrot.lane.b32.xlu0 %v1216_v22, %s1429_s16  ;;  %845 = vst [vmem:[#allocation2 + $0x2] sm:$0x3] %v844_v21  ;;  %v772_v23 = vcombine.high %v1216_v22, %v1216_v22  ;;  %v1502_v25 = vld [vmem:[#allocation2] sm:$0x3] }
  0x25   :  { %842 = vst [vmem:[#allocation2] sm:$0x3] %v841_v26  ;;  %v693_v60 = vsel %vm181_vm2, %v1502_v25, 0 }
  0x27   :  { %775 = vrot.lane.b32.xlu1 %v772_v23, %s1429_s16 }
  0x28   :  { %327 = vrot.lane.b32.xlu0 %v1182_v12, %s1428_s15 }
  0x2b   :  { %329 = vrot.lane.b32.xlu1 %v419_v14, %s1428_s15 }
  0x2c   :  { %930 = vperm.xlu0 %1403, %v924_v28   ;;  %v846_v4 = vld [vmem:[#allocation2] sm:$0x3] }
  0x2d   :  { %v869_v7 = vsel %vm181_vm2, %v846_v4, 0 }
  0x2f   :  { %935 = vperm.xlu1 %1404, %v925_v27  }
  0x30   :  { %945 = vperm.xlu0 %1403, %v927_v31  }
  0x33   :  { %940 = vperm.xlu1 %1404, %v926_v30  }
  0x85   :  { %v421_v32 = vpop.permute.xlu0 %420 }
  0x89   :  { %v423_v33 = vpop.permute.xlu0 %422 }
  0x8a   :  { %v425_v34 = vsel %vm424_vm1, %v421_v32, %v423_v33 }
  0x8b   :  { %1391 = vmatprep.subr.msk.bf16.mxu0 %vm181_vm2, %v425_v34  ;;  %v433_v35 = vsel %vm181_vm2, %v425_v34, 0  ;;  %v954_v34 = vld [vmem:[%s1635_s4] sm:$0xf] }
  0x8c   :  { %1305 = vmatpush3.bf16.msra.mxu0 %v433_v35  ;;  %v1011_v35 = vld [vmem:[%s1636_s5] sm:$0xff] }
  0x8d   :  { %v598_v38 = vpop.permute.xlu1 %597  ;;  %1392 = vmatprep.subr.msk.bf16.mxu0 %vm181_vm2, %v494_v19  ;;  %v169_v41 = vpop.permute.xlu0 %168 }
  0x8f   :  { %1307 = vmatmul.mubr.msk.bf16.vlgmr.msra.gmra.mrb[0].mxu0 %vm174_vm0, %v1406_v36 }
  0x90   :  { %1311 = vmatpush3.bf16.msra.mxu0 %v517_v39  ;;  %1312 = vmatprep.mubr.msk.bf16.mxu0 %vm174_vm0, %v1408_v37 }
  0x91   :  { %v600_v40 = vpop.permute.xlu1 %599 }
  0x92   :  { %v601_v42 = vsel %vm331_vm3, %v598_v38, %v600_v40 }
  0x93   :  { %1393 = vmatprep.subr.msk.bf16.mxu0 %vm181_vm2, %v601_v42  ;;  %v609_v49 = vsel %vm181_vm2, %v601_v42, 0 }
  0x95   :  { %v171_v43 = vpop.permute.xlu1 %170 }
  0x96   :  { %v774_v44 = vpop.permute.xlu0 %773  ;;  %v173_v45 = vsel %vm172_vm4, %v169_v41, %v171_v43 }
  0x97   :  { %1388 = vmatprep.subr.msk.bf16.mxu1 %vm181_vm2, %v173_v45  ;;  %v183_v46 = vsel %vm181_vm2, %v173_v45, 0 }
  0x98   :  { %1287 = vmatpush3.bf16.msra.mxu1 %v183_v46 }
  0x99   :  { %1389 = vmatprep.subr.msk.bf16.mxu1 %vm181_vm2, %v1493_v13  ;;  %v776_v53 = vpop.permute.xlu1 %775 }
  0x9a   :  { %v328_v54 = vpop.permute.xlu0 %327  ;;  %v777_v63 = vsel %vm172_vm4, %v774_v44, %v776_v53 }
  0x9b   :  { %1289 = vmatmul.mubr.msk.bf16.vlgmr.msra.gmra.mrb[0].mxu1 %vm174_vm0, %v1409_v47  ;;  %1313 = vmatmul.mubr.msk.bf16.vlgmr.msra.gmra.mrb[0].mxu0 %vm174_vm0, %v1410_v48  ;;  %v785_v3 = vsel %vm181_vm2, %v777_v63, 0  ;;  %v1012_v48 = vld [vmem:[%s1636_s5 + $0x8] sm:$0xff] }
  0x9c   :  { %1317 = vmatpush3.bf16.msra.mxu0 %v609_v49  ;;  %1293 = vmatpush3.bf16.msra.mxu1 %v251_v50  ;;  %v1013_v49 = vld [vmem:[%s1636_s5 + $0x10] sm:$0xff]  ;;  %v1014_v50 = vld [vmem:[%s1636_s5 + $0x18] sm:$0xff] }
  0x9d   :  { %1294 = vmatprep.mubr.msk.bf16.mxu1 %vm174_vm0, %v1411_v51  ;;  %1318 = vmatprep.mubr.msk.bf16.mxu0 %vm174_vm0, %v1412_v52  ;;  %v330_v55 = vpop.permute.xlu1 %329 }
  0x9e   :  { %v332_v56 = vsel %vm331_vm3, %v328_v54, %v330_v55  ;;  %1394 = vmatprep.subr.msk.bf16.mxu0 %vm181_vm2, %v1502_v25 }
  0x9f   :  { %1390 = vmatprep.subr.msk.bf16.mxu1 %vm181_vm2, %v332_v56  ;;  %v340_v59 = vsel %vm181_vm2, %v332_v56, 0 }
  0xa7   :  { %1295 = vmatmul.mubr.msk.bf16.vlgmr.msra.gmra.mrb[0].mxu1 %vm174_vm0, %v1413_v57  ;;  %1319 = vmatmul.mubr.msk.bf16.vlgmr.msra.gmra.mrb[0].mxu0 %vm174_vm0, %v1414_v58 }
  0xa8   :  { %1323 = vmatpush3.bf16.msra.mxu0 %v693_v60  ;;  %1299 = vmatpush3.bf16.msra.mxu1 %v340_v59 }
  0xa9   :  { %1300 = vmatprep.mubr.msk.bf16.mxu1 %vm174_vm0, %v1415_v61  ;;  %1324 = vmatprep.mubr.msk.bf16.mxu0 %vm174_vm0, %v1416_v62 }
  0xaa   :  { %1395 = vmatprep.subr.msk.bf16.mxu0 %vm181_vm2, %v777_v63  ;;  %1340 = vmatprep.subr.bf16.mxu1 %v1431_v9 }
  0xab   :  { %v931_v14 = vpop.permute.xlu0 %930 }
  0xae   :  { %v936_v15 = vpop.permute.xlu1 %935 }
  0xaf   :  { %v946_v23 = vpop.permute.xlu0 %945 }
  0xb2   :  { %v941_v25 = vpop.permute.xlu1 %940 }
  0xb3   :  { %1301 = vmatmul.mubr.msk.bf16.vlgmr.msra.gmra.mrb[0].mxu1 %vm174_vm0, %v1417_v0  ;;  %1325 = vmatmul.mubr.msk.bf16.vlgmr.msra.gmra.mrb[0].mxu0 %vm174_vm0, %v1418_v1 }
  0xb4   :  { %1329 = vmatpush3.bf16.msra.mxu0 %v785_v3  ;;  %1330 = vmatprep.mubr.msk.bf16.mxu0 %vm174_vm0, %v1419_v2 }
  0xb5   :  { %1396 = vmatprep.subr.msk.bf16.mxu0 %vm181_vm2, %v846_v4  ;;  %1344 = vmatprep.mubr.msk.bf16.mxu1 %vm1432_vm5, %v1431_v9 }
  0xbf   :  { %1331 = vmatmul.mubr.msk.bf16.vlgmr.msra.gmra.mrb[0].mxu0 %vm174_vm0, %v1420_v5 }
  0xc0   :  { %1335 = vmatpush3.bf16.msra.mxu0 %v869_v7  ;;  %1336 = vmatprep.mubr.msk.bf16.mxu0 %vm174_vm0, %v1421_v6 }
  0xcb   :  { %1337 = vmatmul.mubr.msk.bf16.vlgmr.msra.gmra.mrb[0].mxu0 %vm174_vm0, %v1422_v8 }
 0x186   :  { %v1302_v10 = vpop.f32.mrb[0].mxu1 }
 0x187   :  { %v376_v11 = vpop.f32.mrb[1].mxu1 }
 0x188   :  { %v1303_v12 = vpop.f32.mrb[2].mxu1 }
 0x189   :  { %v379_v13 = vpop.f32.mrb[3].mxu1 }
 0x19e   :  { %v1338_v16 = vpop.f32.mrb[0].mxu0 }
 0x19f   :  { %v1356_v17 = vadd.f32 %v1338_v16, %v1302_v10  ;;  %v905_v18 = vpop.f32.mrb[1].mxu0 }
 0x1a0   :  { %v1357_v19 = vadd.f32 %v905_v18, %v376_v11  ;;  %v1339_v20 = vpop.f32.mrb[2].mxu0 }
 0x1a1   :  { %v1358_v21 = vadd.f32 %v1339_v20, %v1303_v12  ;;  %v908_v22 = vpop.f32.mrb[3].mxu0  ;;  %v950_v29 = vadd.f32 %v1356_v17, %v941_v25 }
 0x1a2   :  { %v1359_v24 = vadd.f32 %v908_v22, %v379_v13  ;;  %v948_v26 = vadd.f32 %v1357_v19, %v931_v14 }
 0x1a3   :  { %v951_v28 = vadd.f32 %v1358_v21, %v946_v23 }
 0x1a4   :  { %v949_v27 = vadd.f32 %v1359_v24, %v936_v15 }
 0x1a5   :  { %v953_v32 = vpack.c.bf16 %v951_v28, %v950_v29 }
 0x1a6   :  { %v952_v30 = vpack.c.bf16 %v949_v27, %v948_v26 }
 0x1a7   :  { %v956_v33 = vmul.bf16 %v953_v32, %v953_v32 }
 0x1a8   :  { %v955_v31 = vmul.bf16 %v952_v30, %v952_v30 }
 0x1aa   :  { %1341 = vmatpush3.bf16.msra.mxu1 %v955_v31 }
 0x1ab   :  { %1342 = vmatprep.subr.bf16.mxu1 %v1431_v9 }
 0x1ae   :  { %1343 = vmatpush3.bf16.msra.mxu1 %v956_v33 }
 0x1b1   :  { %1345 = vmatmul.mubr.msk.bf16.vlgmr.msra.gmra.mrb[4].mxu1 %vm957_vm6, %v954_v34 }
 0x1b2   :  { %1350 = vmatprep.mubr.msk.f32.mxu1 %vm1015_vm7, %v1011_v35 }
 0x284   :  { %v995_v36 = vpop.f32.mrb[4].mxu1 }
 0x285   :  { %1423 = vrsqrt.f32 %v995_v36  ;;  %v1346_v37 = vpop.f32.mrb[5].mxu1  ;;  %v1008_v39 = vadd.f32 1.0, %v995_v36  ;;  %vm1003_vm8 = vcmp.eq.f32.partialorder %v995_v36, inf  ;;  %v1006_v43 = vand.u32 2147483648, %v995_v36 }
 0x286   :  { %v998_v38 = vpop.f32.mrb[6].mxu1  ;;  %vm1005_vm9 = vcmp.eq.f32.partialorder %v995_v36, 0.0 }
 0x287   :  { %v1347_v40 = vpop.f32.mrb[7].mxu1  ;;  %1425 = vrcp.f32 %v1008_v39 }
 0x28f   :  { %v1424_v41 = vpop.eup %1423 }
 0x290   :  { %v1002_v42 = vmul.f32 %v1424_v41, %v995_v36 }
 0x291   :  { %v1426_v45 = vpop.eup %1425 }
 0x292   :  { %v1004_v44 = vsel %vm1003_vm8, %v995_v36, %v1002_v42 }
 0x293   :  { %v1007_v46 = vsel %vm1005_vm9, %v1006_v43, %v1004_v44 }
 0x294   :  { %v1010_v47 = vmul.f32 %v1426_v45, %v1007_v46 }
 0x296   :  { %1348 = vmatprep.subr.mxu1 %v1010_v47 }
 0x297   :  { %1349 = vmatpush3.msra.mxu1 %v1010_v47 }
 0x298   :  { %1351 = vmatmul.mubr.msk.f32.vlgmr.msra.gmra.mrb[8].mxu1 %vm1015_vm7, %v1012_v48 }
 0x299   :  { %1353 = vmatprep.mubr.msk.f32.mxu1 %vm1015_vm7, %v1013_v49 }
 0x29c   :  { %1354 = vmatmul.mubr.msk.f32.gmra.mrb[10].mxu1 %vm1015_vm7, %v1014_v50 }
 0x36b   :  { %v1352_v51 = vpop.f32.mrb[8].mxu1 }
 0x36c   :  { %v1114_v52 = vmul.f32 %v1352_v51, %v949_v27  ;;  %v1094_v53 = vpop.f32.mrb[9].mxu1 }
 0x36d   :  { %v1113_v54 = vmul.f32 %v1094_v53, %v948_v26 }
 0x36f   :  { %v1243_v55 = vpack.c.bf16 %v1114_v52, %v1113_v54  ;;  %v1355_v56 = vpop.f32.mrb[10].mxu1 }
 0x370   :  { %v1116_v57 = vmul.f32 %v1355_v56, %v951_v28  ;;  %v1104_v58 = vpop.f32.mrb[11].mxu1 }
 0x371   :  { %1244 = vst [vmem:[%s1637_s6] sm:$0xff] %v1243_v55   ;;  %v1115_v59 = vmul.f32 %v1104_v58, %v950_v29 }
 0x373   :  { %v1248_v60 = vpack.c.bf16 %v1116_v57, %v1115_v59 }
 0x375   :  { %1250 = vst [vmem:[%s1637_s6 + $0x8] sm:$0xff] %v1248_v60  }

</bundles_post_ra>
